<compile_context>
chip_gen: v7x
topology: tpu7x:2x2x1
jax: 0.10.0
libtpu: 0.0.40
codegen_flags: <defaults>
</compile_context>

<pallas_src>
import functools

import jax
import jax.numpy as jnp
from jax import lax
from jax.experimental import pallas as pl
from jax.experimental.pallas import tpu as pltpu


def _weighted_loss_kernel(w_ref, p_ref, l_ref, out_ref, acc_ref, *,
                          n_losses, tb, acc_rows, batch, needs_mask):
    """Streaming weighted squared-error reduction.

    Per grid step: for each `acc_rows`-row chunk of the (n_losses, tb, D) block,
      acc[acc_rows, D] += sum_h w_h * (p_h - l_h)^2        (pure VPU adds)
    Rows >= batch (ragged last tile padding) are masked out with a select.
    Epilogue (last step of the reduction axis): a single cross-lane jnp.sum of
    the small accumulator into this split's scalar output slot.
    """
    i = pl.program_id(1)  # batch-tile (reduction) axis

    @pl.when(i == 0)
    def _():
        acc_ref[...] = jnp.zeros_like(acc_ref)

    # Global batch-row offset of this tile (splits cover contiguous row ranges).
    row0 = (pl.program_id(0) * pl.num_programs(1) + i) * tb

    d_lanes = acc_ref.shape[1]
    if needs_mask:
        row_iota = lax.broadcasted_iota(jnp.int32, (acc_rows, d_lanes), 0)

    n_chunks = tb // acc_rows
    for r in range(n_chunks):            # static, small
        term = None
        for h in range(n_losses):        # static, tiny
            p = p_ref[h, pl.ds(r * acc_rows, acc_rows), :]
            l = l_ref[h, pl.ds(r * acc_rows, acc_rows), :]
            d = (p - l).astype(jnp.float32)   # subtract in input dtype; one cast
            t = w_ref[h] * (d * d)            # SMEM scalar * vreg tile (VPU)
            term = t if term is None else term + t
        if needs_mask:
            # Rows past `batch` are unspecified out-of-bounds padding: select 0.
            valid = row_iota < (batch - row0 - r * acc_rows)
            term = jnp.where(valid, term, 0.0)
        acc_ref[...] += term

    @pl.when(i == pl.num_programs(1) - 1)
    def _():
        # Single cross-lane reduction per split, done once in the epilogue.
        out_ref[...] = jnp.sum(acc_ref[...]).reshape(1, 1, 1)


def _sublane_multiple(itemsize):
    return {4: 8, 2: 16, 1: 32}.get(itemsize, 8)


def _vmem_budget_and_limit():
    """Per-generation VMEM budget for kernel buffers + compiler scoped limit."""
    try:
        cap = int(pltpu.get_tpu_info().vmem_capacity_bytes)
    except Exception:
        cap = 64 << 20  # conservative fallback: v7x per-TensorCore VMEM
    budget = min((cap * 5) // 8, 96 << 20)     # ~40 MiB on v7x, ~80 MiB on v5e/v6e
    limit = min(cap, budget + (16 << 20))      # headroom for Mosaic internal scratch
    return budget, limit


def _choose_tiling(B, n_losses, D, itemsize, budget, *, cap_rows=4096):
    """Largest batch tile whose double-buffered blocks (+ small acc) fit `budget`."""
    sublane = _sublane_multiple(itemsize)
    per_row = 2 * 2 * n_losses * D * itemsize      # 2 inputs x 2 pipeline buffers
    acc_bytes = 128 * D * 4                        # fixed small f32 accumulator
    tb_max = max(sublane, (budget - acc_bytes) // per_row)
    tb_max = min(tb_max, cap_rows)
    b_pad = -(-B // sublane) * sublane
    if b_pad <= tb_max:
        if b_pad <= 128:
            tb = b_pad                              # whole (padded) batch, one tile
        else:
            tb = max(128, min(-(-b_pad // 128) * 128, (tb_max // 128) * 128))
    else:
        if tb_max >= 128:
            tb = (tb_max // 128) * 128
        else:
            tb = max(sublane, (tb_max // sublane) * sublane)
    acc_rows = min(128, tb)
    return tb, acc_rows


def _num_tensorcores():
    """2 on v7x-class chips (2 TCs/chip), else 1. Heuristic, safe fallback."""
    try:
        kind = jax.devices()[0].device_kind.lower()
    except Exception:
        return 1
    return 2 if "v7" in kind else 1


def weighted_loss(preds, labels, loss_weights, *, tb=None, num_splits=None):
    """preds/labels: [N_LOSSES, B, D] (any float dtype); loss_weights: [N_LOSSES].

    Returns scalar f32: (sum_h w_h * (preds_h - labels_h)^2).mean() over [B, D].
    """
    n_losses, B, D = preds.shape
    assert labels.shape == preds.shape
    assert D % 128 == 0, "feature dim must be a multiple of the 128-lane axis"
    itemsize = preds.dtype.itemsize
    sublane = _sublane_multiple(itemsize)

    budget, vmem_limit = _vmem_budget_and_limit()
    if tb is None:
        tb, acc_rows = _choose_tiling(B, n_losses, D, itemsize, budget)
    else:
        assert tb % sublane == 0, (tb, sublane)
        assert tb <= 128 or tb % 128 == 0, tb
        acc_rows = min(128, tb)

    n_tiles = -(-B // tb)                 # ceil-div; no B % tb == 0 requirement
    needs_mask = (n_tiles * tb) != B

    if num_splits is None:
        cores = _num_tensorcores()
        num_splits = cores if (cores > 1 and n_tiles % cores == 0) else 1
    assert n_tiles % num_splits == 0, (n_tiles, num_splits)
    tiles_per_split = n_tiles // num_splits

    loss_weights = jnp.asarray(loss_weights, dtype=jnp.float32)
    assert loss_weights.shape == (n_losses,)

    kernel = functools.partial(
        _weighted_loss_kernel, n_losses=n_losses, tb=tb, acc_rows=acc_rows,
        batch=B, needs_mask=needs_mask)

    in_map = lambda c, i, w: (0, c * tiles_per_split + i, 0)

    cost = pl.CostEstimate(
        flops=5 * n_losses * B * D,
        transcendentals=0,
        bytes_accessed=2 * n_losses * B * D * itemsize + (n_losses + num_splits) * 4,
    )

    partials = pl.pallas_call(
        kernel,
        out_shape=jax.ShapeDtypeStruct((num_splits, 1, 1), jnp.float32),
        grid_spec=pltpu.PrefetchScalarGridSpec(
            num_scalar_prefetch=1,                        # loss_weights -> SMEM
            grid=(num_splits, tiles_per_split),
            in_specs=[
                pl.BlockSpec((n_losses, tb, D), in_map),
                pl.BlockSpec((n_losses, tb, D), in_map),
            ],
            # One scalar output slot per split; constant along the reduction axis
            # (accumulator pattern), distinct along the parallel axis (no race).
            out_specs=pl.BlockSpec((1, 1, 1), lambda c, i, w: (c, 0, 0)),
            scratch_shapes=[pltpu.VMEM((acc_rows, D), jnp.float32)],
        ),
        compiler_params=pltpu.CompilerParams(
            dimension_semantics=("parallel", "arbitrary"),
            vmem_limit_bytes=int(vmem_limit)),
        cost_estimate=cost,
    )(loss_weights, preds, labels)

    inv_n_elems = jnp.float32(1.0 / (B * D))   # .mean() over one head's [B, D]
    return jnp.sum(partials) * inv_n_elems


if __name__ == "__main__":
    # Deterministic small problem: 3 loss heads, batch 32, 256 flattened features.
    N_LOSSES, B, D = 3, 32, 256
    key = jax.random.PRNGKey(0)
    kp, kl = jax.random.split(key)
    preds = jax.random.normal(kp, (N_LOSSES, B, D), dtype=jnp.float32)
    labels = jax.random.normal(kl, (N_LOSSES, B, D), dtype=jnp.float32)
    loss_weights = jnp.array([0.5, 1.0, 2.0], dtype=jnp.float32)   # __init__ loss_weights

    # Pure-JAX reference of the PyTorch forward.
    per_head = (preds - labels) ** 2                               # get_losses
    ref = jnp.einsum("i,ibd->bd", loss_weights, per_head).mean()

    # 1) Default config (auto tile size; single grid step at this toy size).
    out = jax.block_until_ready(weighted_loss(preds, labels, loss_weights))
    assert jnp.allclose(out, ref, rtol=1e-5, atol=1e-5), (out, ref)

    # 2) Force the large-problem path: multi-tile reduction + explicit 2-way split.
    out2 = jax.block_until_ready(
        weighted_loss(preds, labels, loss_weights, tb=8, num_splits=2))
    assert jnp.allclose(out2, ref, rtol=1e-5, atol=1e-5), (out2, ref)

    # 3) Ragged batch (B not a multiple of tb): masked last tile, no padding copy.
    B_R = 40
    preds_r = jax.random.normal(kp, (N_LOSSES, B_R, D), dtype=jnp.float32)
    labels_r = jax.random.normal(kl, (N_LOSSES, B_R, D), dtype=jnp.float32)
    ref_r = jnp.einsum("i,ibd->bd", loss_weights, (preds_r - labels_r) ** 2).mean()
    out_r = jax.block_until_ready(
        weighted_loss(preds_r, labels_r, loss_weights, tb=16, num_splits=1))
    assert jnp.allclose(out_r, ref_r, rtol=1e-5, atol=1e-5), (out_r, ref_r)

    # 4) bf16 inputs (half the HBM bytes); tb respects the bf16 16-row sublane tile.
    preds_bf = preds.astype(jnp.bfloat16)
    labels_bf = labels.astype(jnp.bfloat16)
    out_bf = jax.block_until_ready(
        weighted_loss(preds_bf, labels_bf, loss_weights, tb=16, num_splits=1))
    ref_bf = jnp.einsum(
        "i,ibd->bd", loss_weights,
        (preds_bf - labels_bf).astype(jnp.float32) ** 2).mean()
    assert jnp.allclose(out_bf, ref_bf, rtol=2e-2, atol=2e-2), (out_bf, ref_bf)

    print("KERNEL_OK")
</pallas_src>

<mosaic_0001>
module attributes {stable_mosaic.version = 11 : i64} {
  func.func @_weighted_loss_kernel(%arg0: i32, %arg1: i32, %arg2: memref<3xf32, #tpu.memory_space<smem>>, %arg3: memref<3x32x256xf32, #tpu.memory_space<vmem>>, %arg4: memref<3x32x256xf32, #tpu.memory_space<vmem>>, %arg5: memref<1x1x1xf32, #tpu.memory_space<vmem>>, %arg6: memref<32x256xf32, #tpu.memory_space<vmem>>) attributes {dimension_semantics = [#tpu.dimension_semantics<parallel>, #tpu.dimension_semantics<arbitrary>], iteration_bounds = array<i64: 1, 1>, scalar_prefetch = 1 : i64, scratch_operands = 1 : i64, tpu.core_type = #tpu.core_type<tc>, window_params = [{transform_indices = @transform_0, window_bounds = array<i64: 3, 32, 256>}, {transform_indices = @transform_1, window_bounds = array<i64: 3, 32, 256>}, {transform_indices = @transform_2, window_bounds = array<i64: 1, 1, 1>}]} {
    %c0_i32 = arith.constant 0 : i32
    %0 = arith.cmpi eq, %arg1, %c0_i32 : i32
    %1 = arith.extui %0 : i1 to i32
    %c0_i32_0 = arith.constant 0 : i32
    %2 = arith.cmpi ne, %1, %c0_i32_0 : i32
    scf.if %2 {
      %cst = arith.constant 0.000000e+00 : f32
      %38 = vector.broadcast %cst : f32 to vector<32x256xf32>
      %c0_25 = arith.constant 0 : index
      %c0_26 = arith.constant 0 : index
      %39 = vector.load %arg6[%c0_25, %c0_26] : memref<32x256xf32, #tpu.memory_space<vmem>>, vector<32x256xf32>
      tpu.vector_store %arg6[%c0_25, %c0_26], %38 {strides = array<i32>} : memref<32x256xf32, #tpu.memory_space<vmem>>, vector<32x256xf32>,
    } else {
    }
    %c0 = arith.constant 0 : index
    %c0_1 = arith.constant 0 : index
    %c0_2 = arith.constant 0 : index
    %3 = vector.load %arg3[%c0, %c0_1, %c0_2] : memref<3x32x256xf32, #tpu.memory_space<vmem>>, vector<1x32x256xf32>
    %4 = vector.shape_cast %3 : vector<1x32x256xf32> to vector<32x256xf32>
    %c0_3 = arith.constant 0 : index
    %c0_4 = arith.constant 0 : index
    %c0_5 = arith.constant 0 : index
    %5 = vector.load %arg4[%c0_3, %c0_4, %c0_5] : memref<3x32x256xf32, #tpu.memory_space<vmem>>, vector<1x32x256xf32>
    %6 = vector.shape_cast %5 : vector<1x32x256xf32> to vector<32x256xf32>
    %7 = arith.subf %4, %6 : vector<32x256xf32>
    %c0_6 = arith.constant 0 : index
    %8 = memref.load %arg2[%c0_6] : memref<3xf32, #tpu.memory_space<smem>>
    %9 = arith.mulf %7, %7 : vector<32x256xf32>
    %10 = vector.broadcast %8 : f32 to vector<32x256xf32>
    %11 = arith.mulf %10, %9 : vector<32x256xf32>
    %c1 = arith.constant 1 : index
    %c0_7 = arith.constant 0 : index
    %c0_8 = arith.constant 0 : index
    %12 = vector.load %arg3[%c1, %c0_7, %c0_8] : memref<3x32x256xf32, #tpu.memory_space<vmem>>, vector<1x32x256xf32>
    %13 = vector.shape_cast %12 : vector<1x32x256xf32> to vector<32x256xf32>
    %c1_9 = arith.constant 1 : index
    %c0_10 = arith.constant 0 : index
    %c0_11 = arith.constant 0 : index
    %14 = vector.load %arg4[%c1_9, %c0_10, %c0_11] : memref<3x32x256xf32, #tpu.memory_space<vmem>>, vector<1x32x256xf32>
    %15 = vector.shape_cast %14 : vector<1x32x256xf32> to vector<32x256xf32>
    %16 = arith.subf %13, %15 : vector<32x256xf32>
    %c1_12 = arith.constant 1 : index
    %17 = memref.load %arg2[%c1_12] : memref<3xf32, #tpu.memory_space<smem>>
    %18 = arith.mulf %16, %16 : vector<32x256xf32>
    %19 = vector.broadcast %17 : f32 to vector<32x256xf32>
    %20 = arith.mulf %19, %18 : vector<32x256xf32>
    %21 = arith.addf %11, %20 : vector<32x256xf32>
    %c2 = arith.constant 2 : index
    %c0_13 = arith.constant 0 : index
    %c0_14 = arith.constant 0 : index
    %22 = vector.load %arg3[%c2, %c0_13, %c0_14] : memref<3x32x256xf32, #tpu.memory_space<vmem>>, vector<1x32x256xf32>
    %23 = vector.shape_cast %22 : vector<1x32x256xf32> to vector<32x256xf32>
    %c2_15 = arith.constant 2 : index
    %c0_16 = arith.constant 0 : index
    %c0_17 = arith.constant 0 : index
    %24 = vector.load %arg4[%c2_15, %c0_16, %c0_17] : memref<3x32x256xf32, #tpu.memory_space<vmem>>, vector<1x32x256xf32>
    %25 = vector.shape_cast %24 : vector<1x32x256xf32> to vector<32x256xf32>
    %26 = arith.subf %23, %25 : vector<32x256xf32>
    %c2_18 = arith.constant 2 : index
    %27 = memref.load %arg2[%c2_18] : memref<3xf32, #tpu.memory_space<smem>>
    %28 = arith.mulf %26, %26 : vector<32x256xf32>
    %29 = vector.broadcast %27 : f32 to vector<32x256xf32>
    %30 = arith.mulf %29, %28 : vector<32x256xf32>
    %31 = arith.addf %21, %30 : vector<32x256xf32>
    %c0_19 = arith.constant 0 : index
    %c0_20 = arith.constant 0 : index
    %32 = vector.load %arg6[%c0_19, %c0_20] : memref<32x256xf32, #tpu.memory_space<vmem>>, vector<32x256xf32>
    %33 = arith.addf %32, %31 : vector<32x256xf32>
    %c0_21 = arith.constant 0 : index
    %c0_22 = arith.constant 0 : index
    %34 = vector.load %arg6[%c0_21, %c0_22] : memref<32x256xf32, #tpu.memory_space<vmem>>, vector<32x256xf32>
    tpu.vector_store %arg6[%c0_21, %c0_22], %33 {strides = array<i32>} : memref<32x256xf32, #tpu.memory_space<vmem>>, vector<32x256xf32>,
    %c0_i32_23 = arith.constant 0 : i32
    %35 = arith.cmpi eq, %arg1, %c0_i32_23 : i32
    %36 = arith.extui %35 : i1 to i32
    %c0_i32_24 = arith.constant 0 : i32
    %37 = arith.cmpi ne, %36, %c0_i32_24 : i32
    scf.if %37 {
      %c0_25 = arith.constant 0 : index
      %c0_26 = arith.constant 0 : index
      %38 = vector.load %arg6[%c0_25, %c0_26] : memref<32x256xf32, #tpu.memory_space<vmem>>, vector<32x256xf32>
      %39 = vector.shape_cast %38 : vector<32x256xf32> to vector<1x32x256xf32>
      %cst = arith.constant dense<0.000000e+00> : vector<1xf32>
      %40 = vector.multi_reduction <add>, %39, %cst [1, 2] : vector<1x32x256xf32> to vector<1xf32>
      %41 = vector.shape_cast %40 : vector<1xf32> to vector<1x1x1xf32>
      %42 = vector.extract %41[0, 0, 0] : f32 from vector<1x1x1xf32>
      %43 = vector.broadcast %42 : f32 to vector<1x1x1xf32>
      %c0_27 = arith.constant 0 : index
      %c0_28 = arith.constant 0 : index
      %c0_29 = arith.constant 0 : index
      %44 = vector.load %arg5[%c0_27, %c0_28, %c0_29] : memref<1x1x1xf32, #tpu.memory_space<vmem>>, vector<1x1x1xf32>
      tpu.vector_store %arg5[%c0_27, %c0_28, %c0_29], %43 {strides = array<i32>} : memref<1x1x1xf32, #tpu.memory_space<vmem>>, vector<1x1x1xf32>,
    } else {
    }
    return
  }
  func.func @transform_0(%arg0: i32, %arg1: i32, %arg2: memref<3xf32, #tpu.memory_space<smem>>) -> (i32, i32, i32) {
    %c1_i32 = arith.constant 1 : i32
    %0 = arith.muli %arg0, %c1_i32 : i32
    %1 = arith.addi %0, %arg1 : i32
    %c0_i32 = arith.constant 0 : i32
    %c0_i32_0 = arith.constant 0 : i32
    %c0_i32_1 = arith.constant 0 : i32
    return %c0_i32, %1, %c0_i32_0 : i32, i32, i32
  }
  func.func @transform_1(%arg0: i32, %arg1: i32, %arg2: memref<3xf32, #tpu.memory_space<smem>>) -> (i32, i32, i32) {
    %c1_i32 = arith.constant 1 : i32
    %0 = arith.muli %arg0, %c1_i32 : i32
    %1 = arith.addi %0, %arg1 : i32
    %c0_i32 = arith.constant 0 : i32
    %c0_i32_0 = arith.constant 0 : i32
    %c0_i32_1 = arith.constant 0 : i32
    return %c0_i32, %1, %c0_i32_0 : i32, i32, i32
  }
  func.func @transform_2(%arg0: i32, %arg1: i32, %arg2: memref<3xf32, #tpu.memory_space<smem>>) -> (i32, i32, i32) {
    %c0_i32 = arith.constant 0 : i32
    %c0_i32_0 = arith.constant 0 : i32
    %c0_i32_1 = arith.constant 0 : i32
    return %arg0, %c0_i32, %c0_i32_0 : i32, i32, i32
  }
}

</mosaic_0001>

<bundles_post_ra>
// kernel: tpu_custom_call.1
= control target key start
LH: loop header
LB: loop body
LE: loop exit
PB: predicated region body
PF: predicated region fallthrough
CT: control target
= control target key end

     0   :  { %s491_s0 = inlined_call_operand.hbm [shape: f32[3], index: 0, kind: input, shape index: {}]   ;;  %s492_s1 = inlined_call_operand.hbm [shape: f32[3,32,256], index: 1, kind: input, shape index: {}]   ;;  %s493_s2 = inlined_call_operand.hbm [shape: f32[3,32,256], index: 2, kind: input, shape index: {}]   ;;  %s494_s3 = inlined_call_operand.hbm [shape: f32[1,1,1], index: 3, kind: output, shape index: {}]  }
   0x1   :  { %s297_s14 = scalar_lea.hbm %s491_s0, 16 }
   0x2   :  { %p298_p0 = scmp.ne.s32.totalorder %s491_s0, %s297_s14  ;;  %p301_p1 = scmp.lt.u32.totalorder %s297_s14, %s491_s0 }
   0x4   :  { %p303_p2 = pnand %p301_p1, %p298_p0 }
   0x6   :  { %306 = shalt.err (!%p303_p2)  }
   0x7   :  { %s381_s19 = smov [#allocation4]  }
   0x8   :  { %9 = dma.hbm_to_smem %s491_s0, 16, %s381_s19, [#allocation3] }
   0x9   :  { %373 = dma.done.wait [#allocation3], 16 }
   0xa   :  { %374 = vsyncadd [#allocation3], 4294967280 }
   0xb   :  { %11 = sfence }
   0xc   :  { %12 = vsyncpa [#allocation6], 0 }
   0xd   :  { %13 = vsyncpa [#allocation9], 0 }
   0xe   :  { %14 = vsyncpa [#allocation7], 0  ;;  %s382_s22 = smov [#allocation5]   ;;  %s307_s26 = scalar_lea.hbm %s492_s1, 3072 }
   0xf   :  { %s25_s23 = sshll.u32 %s382_s22, 4  ;;  %p308_p3 = scmp.ne.s32.totalorder %s492_s1, %s307_s26  ;;  %s26_s23 = int_to_ptr.vmem [resolvable:$true] %s25_s23 }
  0x10   :  { %p311_p4 = scmp.lt.u32.totalorder %s307_s26, %s492_s1 }
  0x12   :  { %p313_p5 = pnand %p311_p4, %p308_p3 }
  0x14   :  { %316 = shalt.err (!%p313_p5)
}
  0x15   :  { %s317_s0 = scalar_lea.vmem %s26_s23, 3072  ;;  %p322_p7 = scmp.lt.s32.totalorder %s26_s23, %s26_s23 }
  0x16   :  { %p318_p6 = scmp.ne.s32.totalorder %s26_s23, %s317_s0  ;;  %p323_p8 = scmp.lt.s32.totalorder %s317_s0, %s317_s0 }
  0x18   :  { %p324_p9 = por %p323_p8, %p322_p7 }
  0x1a   :  { %p325_p10 = pnand %p324_p9, %p318_p6 }
  0x1c   :  { %328 = shalt.err (!%p325_p10)
}
  0x1d   :  { %s383_s4 = smov 256   ;;  %s384_s5 = smov 16  }
  0x1e   :  { %31 = dma.hbm_to_vmem [thread:$0]  %s492_s1, 3072, %s26_s23, [#allocation6], %s383_s4, %s383_s4, %s384_s5  }
  0x1f   :  { %s385_s8 = smov [#allocation8]   ;;  %s329_s12 = scalar_lea.hbm %s493_s2, 3072 }
  0x20   :  { %s42_s9 = sshll.u32 %s385_s8, 4  ;;  %p330_p11 = scmp.ne.s32.totalorder %s493_s2, %s329_s12  ;;  %s43_s9 = int_to_ptr.vmem [resolvable:$true] %s42_s9 }
  0x21   :  { %p333_p12 = scmp.lt.u32.totalorder %s329_s12, %s493_s2 }
  0x23   :  { %p335_p13 = pnand %p333_p12, %p330_p11 }
  0x25   :  { %338 = shalt.err (!%p335_p13)
}
  0x26   :  { %s339_s17 = scalar_lea.vmem %s43_s9, 3072  ;;  %p344_p1 = scmp.lt.s32.totalorder %s43_s9, %s43_s9 }
  0x27   :  { %p340_p0 = scmp.ne.s32.totalorder %s43_s9, %s339_s17  ;;  %p345_p2 = scmp.lt.s32.totalorder %s339_s17, %s339_s17 }
  0x29   :  { %p346_p3 = por %p345_p2, %p344_p1 }
  0x2b   :  { %p347_p4 = pnand %p346_p3, %p340_p0 }
  0x2d   :  { %350 = shalt.err (!%p347_p4)
}
  0x2e   :  { %48 = dma.hbm_to_vmem [thread:$0]  %s493_s2, 3072, %s43_s9, [#allocation9], %s383_s4, %s383_s4, %s384_s5  }
  0x2f   :  { %375 = dma.done.wait [#allocation6], 3072  }
  0x30   :  { %376 = vsyncadd [#allocation6], 4294964224 }
  0x31   :  { %377 = dma.done.wait [#allocation9], 3072  }
  0x32   :  { %378 = vsyncadd [#allocation9], 4294964224  ;;  %s95_s19 = sld [smem:[#allocation4]]  ;;  %s443_s20 = sld [smem:[#allocation4 + $0x1]]  ;;  %v71_v0 = vld [vmem:[#allocation5] sm:$0xff]  ;;  %v72_v1 = vld [vmem:[#allocation5 + $0x8] sm:$0xff] }
  0x33   :  { %s445_s21 = sld [smem:[#allocation4 + $0x2]]  ;;  %v73_v2 = vld [vmem:[#allocation5 + $0x10] sm:$0xff]  ;;  %v74_v3 = vld [vmem:[#allocation5 + $0x18] sm:$0xff]  ;;  %v75_v4 = vld [vmem:[#allocation5 + $0x20] sm:$0xff]  ;;  %s386_s2 = smov [#allocation10]   ;;  %vm269_vm0 = vcmask 0  }
  0x34   :  { %v76_v5 = vld [vmem:[#allocation5 + $0x28] sm:$0xff]  ;;  %v79_v6 = vld [vmem:[#allocation8] sm:$0xff]  ;;  %v77_v7 = vld [vmem:[#allocation5 + $0x30] sm:$0xff]  ;;  %s277_s22 = sshll.u32 %s386_s2, 4  ;;  %s278_s22 = int_to_ptr.vmem [resolvable:$true] %s277_s22 }
  0x35   :  { %v78_v8 = vld [vmem:[#allocation5 + $0x38] sm:$0xff]  ;;  %v80_v9 = vld [vmem:[#allocation8 + $0x8] sm:$0xff]  ;;  %v81_v10 = vld [vmem:[#allocation8 + $0x10] sm:$0xff]  ;;  %v87_v15 = vsub.f32 %v71_v0, %v79_v6  ;;  %s351_s24 = scalar_lea.vmem %s278_s22, 16  ;;  %s355_s25 = scalar_lea.vmem %s278_s22, 32 }
  0x36   :  { %v82_v11 = vld [vmem:[#allocation8 + $0x18] sm:$0xff]  ;;  %v83_v12 = vld [vmem:[#allocation8 + $0x20] sm:$0xff]  ;;  %v84_v13 = vld [vmem:[#allocation8 + $0x28] sm:$0xff]  ;;  %v88_v16 = vsub.f32 %v72_v1, %v80_v9  ;;  %v89_v18 = vsub.f32 %v73_v2, %v81_v10  ;;  %p352_p5 = scmp.ne.s32.totalorder %s278_s22, %s351_s24  ;;  %p356_p6 = scmp.lt.s32.totalorder %s278_s22, %s278_s22 }
  0x37   :  { %v85_v14 = vld [vmem:[#allocation8 + $0x30] sm:$0xff]  ;;  %v86_v17 = vld [vmem:[#allocation8 + $0x38] sm:$0xff]  ;;  %v90_v19 = vsub.f32 %v74_v3, %v82_v11  ;;  %v91_v20 = vsub.f32 %v75_v4, %v83_v12  ;;  %v114_v21 = vld [vmem:[#allocation5 + $0x40] sm:$0xff]  ;;  %v92_v23 = vsub.f32 %v76_v5, %v84_v13  ;;  %v96_v35 = vmul.f32 %v87_v15, %v87_v15  ;;  %p357_p7 = scmp.lt.s32.totalorder %s355_s25, %s351_s24 }
  0x38   :  { %v115_v22 = vld [vmem:[#allocation5 + $0x48] sm:$0xff]  ;;  %v116_v24 = vld [vmem:[#allocation5 + $0x50] sm:$0xff]  ;;  %v117_v25 = vld [vmem:[#allocation5 + $0x58] sm:$0xff]  ;;  %v447_v27 = vstv %s95_s19  ;;  %v450_v31 = vstv %s443_s20  ;;  %v93_v33 = vsub.f32 %v77_v7, %v85_v14  ;;  %v94_v34 = vsub.f32 %v78_v8, %v86_v17 }
  0x39   :  { %v118_v26 = vld [vmem:[#allocation5 + $0x60] sm:$0xff]  ;;  %v119_v28 = vld [vmem:[#allocation5 + $0x68] sm:$0xff]  ;;  %v120_v29 = vld [vmem:[#allocation5 + $0x70] sm:$0xff]  ;;  %v453_v32 = vstv %s445_s21  ;;  %v97_v36 = vmul.f32 %v88_v16, %v88_v16  ;;  %v98_v40 = vmul.f32 %v89_v18, %v89_v18  ;;  %v99_v41 = vmul.f32 %v90_v19, %v90_v19  ;;  %p358_p8 = por %p357_p7, %p356_p6 }
  0x3a   :  { %v121_v30 = vld [vmem:[#allocation5 + $0x78] sm:$0xff]  ;;  %v123_v37 = vld [vmem:[#allocation8 + $0x40] sm:$0xff]  ;;  %v124_v38 = vld [vmem:[#allocation8 + $0x48] sm:$0xff]  ;;  %v100_v42 = vmul.f32 %v91_v20, %v91_v20  ;;  %v101_v47 = vmul.f32 %v92_v23, %v92_v23  ;;  %v105_v61 = vmul.f32 %v447_v27, %v96_v35  ;;  %v102_v5 = vmul.f32 %v93_v33, %v93_v33 }
  0x3b   :  { %v125_v39 = vld [vmem:[#allocation8 + $0x50] sm:$0xff]  ;;  %v126_v43 = vld [vmem:[#allocation8 + $0x58] sm:$0xff]  ;;  %v127_v44 = vld [vmem:[#allocation8 + $0x60] sm:$0xff]  ;;  %v131_v46 = vsub.f32 %v114_v21, %v123_v37  ;;  %v132_v50 = vsub.f32 %v115_v22, %v124_v38  ;;  %v106_v62 = vmul.f32 %v447_v27, %v97_v36  ;;  %v103_v6 = vmul.f32 %v94_v34, %v94_v34  ;;  %p359_p9 = pnand %p358_p8, %p352_p5 }
  0x3c   :  { %v128_v45 = vld [vmem:[#allocation8 + $0x68] sm:$0xff]  ;;  %v129_v48 = vld [vmem:[#allocation8 + $0x70] sm:$0xff]  ;;  %v130_v49 = vld [vmem:[#allocation8 + $0x78] sm:$0xff]  ;;  %v133_v51 = vsub.f32 %v116_v24, %v125_v39  ;;  %v134_v52 = vsub.f32 %v117_v25, %v126_v43  ;;  %v135_v53 = vsub.f32 %v118_v26, %v127_v44  ;;  %v107_v13 = vmul.f32 %v447_v27, %v98_v40 }
  0x3d   :  { %v136_v54 = vsub.f32 %v119_v28, %v128_v45  ;;  %v137_v55 = vsub.f32 %v120_v29, %v129_v48  ;;  %v138_v56 = vsub.f32 %v121_v30, %v130_v49  ;;  %v140_v57 = vmul.f32 %v131_v46, %v131_v46  ;;  %v166_v1 = vld [vmem:[#allocation5 + $0x80] sm:$0xff]  ;;  %v167_v2 = vld [vmem:[#allocation5 + $0x88] sm:$0xff]  ;;  %v168_v3 = vld [vmem:[#allocation5 + $0x90] sm:$0xff] }
  0x3e   :  { %v141_v58 = vmul.f32 %v132_v50, %v132_v50  ;;  %v142_v59 = vmul.f32 %v133_v51, %v133_v51  ;;  %v143_v60 = vmul.f32 %v134_v52, %v134_v52  ;;  %v144_v63 = vmul.f32 %v135_v53, %v135_v53  ;;  %v169_v4 = vld [vmem:[#allocation5 + $0x98] sm:$0xff]  ;;  %v170_v9 = vld [vmem:[#allocation5 + $0xa0] sm:$0xff]  ;;  %v171_v10 = vld [vmem:[#allocation5 + $0xa8] sm:$0xff] }
  0x3f   :  { %v145_v0 = vmul.f32 %v136_v54, %v136_v54  ;;  %v149_v7 = vmul.f32 %v450_v31, %v140_v57  ;;  %v172_v11 = vld [vmem:[#allocation5 + $0xb0] sm:$0xff]  ;;  %v175_v12 = vld [vmem:[#allocation8 + $0x80] sm:$0xff]  ;;  %v108_v14 = vmul.f32 %v447_v27, %v99_v41  ;;  %v109_v15 = vmul.f32 %v447_v27, %v100_v42  ;;  %v176_v17 = vld [vmem:[#allocation8 + $0x88] sm:$0xff] }
  0x40   :  { %v150_v8 = vmul.f32 %v450_v31, %v141_v58  ;;  %v151_v16 = vmul.f32 %v450_v31, %v142_v59  ;;  %v177_v18 = vld [vmem:[#allocation8 + $0x90] sm:$0xff]  ;;  %v178_v19 = vld [vmem:[#allocation8 + $0x98] sm:$0xff]  ;;  %v110_v20 = vmul.f32 %v447_v27, %v101_v47  ;;  %v146_v21 = vmul.f32 %v137_v55, %v137_v55  ;;  %v179_v24 = vld [vmem:[#allocation8 + $0xa0] sm:$0xff] }
  0x41   :  { %v147_v22 = vmul.f32 %v138_v56, %v138_v56  ;;  %v152_v23 = vmul.f32 %v450_v31, %v143_v60  ;;  %v180_v25 = vld [vmem:[#allocation8 + $0xa8] sm:$0xff]  ;;  %v181_v26 = vld [vmem:[#allocation8 + $0xb0] sm:$0xff]  ;;  %v153_v28 = vmul.f32 %v450_v31, %v144_v63  ;;  %v154_v29 = vmul.f32 %v450_v31, %v145_v0  ;;  %v173_v34 = vld [vmem:[#allocation5 + $0xb8] sm:$0xff] }
  0x42   :  { %v157_v30 = vadd.f32 %v149_v7, %v105_v61  ;;  %v158_v33 = vadd.f32 %v150_v8, %v106_v62  ;;  %v182_v35 = vld [vmem:[#allocation8 + $0xb8] sm:$0xff]  ;;  %v183_v36 = vsub.f32 %v166_v1, %v175_v12  ;;  %v184_v37 = vsub.f32 %v167_v2, %v176_v17 }
  0x43   :  { %v185_v38 = vsub.f32 %v168_v3, %v177_v18  ;;  %v186_v39 = vsub.f32 %v169_v4, %v178_v19  ;;  %v159_v40 = vadd.f32 %v151_v16, %v107_v13  ;;  %v187_v41 = vsub.f32 %v170_v9, %v179_v24 }
  0x44   :  { %v188_v42 = vsub.f32 %v171_v10, %v180_v25  ;;  %v189_v43 = vsub.f32 %v172_v11, %v181_v26  ;;  %v192_v44 = vmul.f32 %v183_v36, %v183_v36  ;;  %v193_v45 = vmul.f32 %v184_v37, %v184_v37 }
  0x45   :  { %v194_v46 = vmul.f32 %v185_v38, %v185_v38  ;;  %v195_v47 = vmul.f32 %v186_v39, %v186_v39  ;;  %v160_v48 = vadd.f32 %v152_v23, %v108_v14  ;;  %v190_v49 = vsub.f32 %v173_v34, %v182_v35 }
  0x46   :  { %v196_v50 = vmul.f32 %v187_v41, %v187_v41  ;;  %v197_v51 = vmul.f32 %v188_v42, %v188_v42  ;;  %v201_v52 = vmul.f32 %v453_v32, %v192_v44  ;;  %v202_v53 = vmul.f32 %v453_v32, %v193_v45 }
  0x47   :  { %v203_v54 = vmul.f32 %v453_v32, %v194_v46  ;;  %v204_v55 = vmul.f32 %v453_v32, %v195_v47  ;;  %v111_v56 = vmul.f32 %v447_v27, %v102_v5  ;;  %v155_v57 = vmul.f32 %v450_v31, %v146_v21 }
  0x48   :  { %v161_v58 = vadd.f32 %v153_v28, %v109_v15  ;;  %v198_v59 = vmul.f32 %v189_v43, %v189_v43  ;;  %v205_v60 = vmul.f32 %v453_v32, %v196_v50  ;;  %v209_v61 = vadd.f32 %v201_v52, %v157_v30 }
  0x49   :  { %v210_v62 = vadd.f32 %v202_v53, %v158_v33  ;;  %v211_v63 = vadd.f32 %v203_v54, %v159_v40  ;;  %v112_v0 = vmul.f32 %v447_v27, %v103_v6  ;;  %v156_v1 = vmul.f32 %v450_v31, %v147_v22 }
  0x4a   :  { %v162_v2 = vadd.f32 %v154_v29, %v110_v20  ;;  %v199_v3 = vmul.f32 %v190_v49, %v190_v49  ;;  %v206_v4 = vmul.f32 %v453_v32, %v197_v51  ;;  %v212_v7 = vadd.f32 %v204_v55, %v160_v48 }
  0x4b   :  { %v252_v8 = vadd.f32 %v210_v62, %v209_v61  ;;  %v163_v5 = vadd.f32 %v155_v57, %v111_v56  ;;  %v207_v9 = vmul.f32 %v453_v32, %v198_v59  ;;  %v213_v10 = vadd.f32 %v205_v60, %v161_v58 }
  0x4c   :  { %v164_v12 = vadd.f32 %v156_v1, %v112_v0  ;;  %v208_v13 = vmul.f32 %v453_v32, %v199_v3  ;;  %v214_v14 = vadd.f32 %v206_v4, %v162_v2 }
  0x4d   :  { %v253_v11 = vadd.f32 %v252_v8, %v211_v63  ;;  %v215_v16 = vadd.f32 %v207_v9, %v163_v5 }
  0x4e   :  { %v216_v6 = vadd.f32 %v208_v13, %v164_v12 }
  0x4f   :  { %v254_v15 = vadd.f32 %v253_v11, %v212_v7 }
  0x51   :  { %v255_v27 = vadd.f32 %v254_v15, %v213_v10 }
  0x53   :  { %v256_v31 = vadd.f32 %v255_v27, %v214_v14 }
  0x55   :  { %v257_v17 = vadd.f32 %v256_v31, %v215_v16 }
  0x57   :  { %v258_v18 = vadd.f32 %v257_v17, %v216_v6 }
  0x59   :  { %259 = vadd.xlane.f32.xlu0 %v258_v18 }
  0xe6   :  { %v260_v19 = vpop.xlane.xlu0 %259 }
  0xe7   :  { %v261_v20 = vrot.slane %v260_v19, 4 }
  0xe9   :  { %v262_v21 = vadd.f32 %v261_v20, %v260_v19 }
  0xeb   :  { %v263_v22 = vrot.slane %v262_v21, 2 }
  0xed   :  { %v264_v23 = vadd.f32 %v263_v22, %v262_v21 }
  0xef   :  { %v265_v24 = vrot.slane %v264_v23, 1 }
  0xf1   :  { %v266_v25 = vadd.f32 %v265_v24, %v264_v23 }
  0xf3   :  { %289 = vpush %v266_v25 }
 0x124   :  { %s290_s23 = spop %289 }
 0x125   :  { %v268_v32 = vstv %s290_s23 }
 0x126   :  { %270 = vst.msk [vmem:[#allocation10] sm:$0x1] %vm269_vm0, %v268_v32 }
 0x127   :  { %362 = shalt.err (!%p359_p9)
}
 0x128   :  { %s363_s28 = scalar_lea.hbm %s494_s3, 16 }
 0x129   :  { %p364_p10 = scmp.ne.s32.totalorder %s494_s3, %s363_s28  ;;  %p367_p11 = scmp.lt.u32.totalorder %s363_s28, %s494_s3 }
 0x12b   :  { %p369_p12 = pnand %p367_p11, %p364_p10 }
 0x12d   :  { %372 = shalt.err (!%p369_p12)
}
 0x12e   :  { %280 = dma.vmem_to_hbm [thread:$0]  %s278_s22, 16, %s494_s3, [#allocation7]  }
 0x12f   :  { %379 = dma.done.wait [#allocation7], 16  }
 0x130   :  { %380 = vsyncadd [#allocation7], 4294967280 }
 0x131   :  { %284 = vsyncpa [#allocation6], 1 }
 0x132   :  { %285 = vsyncpa [#allocation9], 1 }
 0x133   :  { %286 = vsyncpa [#allocation7], 1 }

</bundles_post_ra>
